<compile_context>
chip_gen: v7x
topology: tpu7x:2x2x1
jax: 0.10.0
libtpu: 0.0.40
codegen_flags: <defaults>
</compile_context>

<pallas_src>
import functools
import math

import jax
import jax.numpy as jnp
import numpy as np
from jax.experimental import pallas as pl
from jax.experimental.pallas import tpu as pltpu


# ----------------------------- fused Pallas kernel -----------------------------
def _patch_embed2_kernel(p1_ref, w1_ref, b1_ref, w2_ref, b2_ref, o_ref, *,
                         ntaps, p2):
    """One batch element per grid step.

    p1_ref : (1, T*P2, K1) bf16  conv1 im2col rows, duplicated tap-major so that
                                 conv2 tap t owns rows [t*P2, (t+1)*P2).
    w1_ref : (K1, D)       bf16  conv1 weight, rows in torch (c, kh, kw) order.
    b1_ref : (1, D)        f32
    w2_ref : (T, D, D)     bf16  conv2 weight per tap, (in, out) layout.
    b2_ref : (1, D)        f32
    o_ref  : (1, P2, D)    f32
    """
    # conv1 + bias + ReLU: one MXU dot over all duplicated patch rows.
    y1 = jnp.dot(p1_ref[0], w1_ref[...], preferred_element_type=jnp.float32)
    y1 = jnp.maximum(y1 + b1_ref[...], 0.0)                  # (T*P2, D) f32

    # conv2 + bias: accumulate the 9 taps; each tap LHS is a static contiguous
    # row slice of y1 (no gather matrices, no scratch slab, no masked stores).
    acc = jnp.zeros(o_ref.shape[1:], jnp.float32)            # (P2, D)
    for t in range(ntaps):                                   # static unroll (9)
        lhs = y1[t * p2:(t + 1) * p2, :].astype(jnp.bfloat16)
        acc = acc + jnp.dot(lhs, w2_ref[t], preferred_element_type=jnp.float32)
    o_ref[0] = acc + b2_ref[...]


# ----------------------------- plain-JAX layout prep -----------------------------
def _im2col(x_nchw, k, s):
    """(B, C, H, W) -> (B, Ho*Wo, C*k*k); feature order (c, kh, kw) = torch Conv2d."""
    B, C, H, W = x_nchw.shape
    Ho = (H - k) // s + 1
    Wo = (W - k) // s + 1
    cols = []
    for kh in range(k):
        for kw in range(k):
            cols.append(x_nchw[:, :, kh:kh + s * (Ho - 1) + 1:s,
                               kw:kw + s * (Wo - 1) + 1:s])
    p = jnp.stack(cols, axis=0).reshape(k, k, B, C, Ho, Wo)
    p = jnp.transpose(p, (2, 4, 5, 3, 0, 1))                 # (B, Ho, Wo, C, kh, kw)
    return p.reshape(B, Ho * Wo, C * k * k), Ho, Wo


def _tap_row_indices(H1, W1, H2, W2, k, s):
    """Constant (T*P2,) index: entry [t*P2 + q] = conv1 raster row feeding conv2
    tap t (= kh*k + kw) at output position q (= h2*W2 + w2). Vectorized numpy."""
    kh = np.repeat(np.arange(k), k)                          # (T,)
    kw = np.tile(np.arange(k), k)                            # (T,)
    h2 = np.repeat(np.arange(H2), W2)                        # (P2,)
    w2 = np.tile(np.arange(W2), H2)                          # (P2,)
    rows = (s * h2[None, :] + kh[:, None]) * W1 + (s * w2[None, :] + kw[:, None])
    return rows.reshape(-1).astype(np.int32)                 # (T*P2,)


# ----------------------------- wrapper -----------------------------
@functools.partial(jax.jit, static_argnames=("ks1", "stride1", "ks2", "stride2"))
def patch_embed2(x, w1, b1, w2, b2, *, ks1, stride1, ks2, stride2):
    """PatchEmbed2 forward (use_norm=False). x: (B, C, H, W) f32 -> (B, H2*W2, D)."""
    # TODO(synk): GroupNorm branch (use_norm=True) is not implemented; the module
    # here is constructed with use_norm=0 -> nn.Identity.
    B, C, H, W = x.shape
    D = w1.shape[0]

    # One-time layout prep (traced under jit, fuses with the pallas_call).
    p1, H1, W1 = _im2col(x, ks1, stride1)                    # (B, P1, K1)
    H2 = (H1 - ks2) // stride2 + 1
    W2 = (W1 - ks2) // stride2 + 1
    P2, T = H2 * W2, ks2 * ks2
    K1 = C * ks1 * ks1

    # Duplicate conv1 patch rows tap-major so conv2 becomes contiguous slices.
    # TODO(synk): at production image sizes, move the conv1 im2col (and this
    # duplication) into the kernel via overlapping BlockSpec windows on x to cut
    # HBM read inflation; at these toy shapes launch overhead dominates anyway.
    dup = jnp.asarray(_tap_row_indices(H1, W1, H2, W2, ks2, stride2))
    p1d = jnp.take(p1, dup, axis=1).astype(jnp.bfloat16)     # (B, T*P2, K1)

    w1m = w1.reshape(D, K1).T.astype(jnp.bfloat16)           # (K1, D)
    w2t = jnp.transpose(w2, (2, 3, 1, 0)).reshape(T, D, D).astype(jnp.bfloat16)
    b1m = b1.reshape(1, D).astype(jnp.float32)
    b2m = b2.reshape(1, D).astype(jnp.float32)

    out = pl.pallas_call(
        functools.partial(_patch_embed2_kernel, ntaps=T, p2=P2),
        out_shape=jax.ShapeDtypeStruct((B, P2, D), jnp.float32),
        grid=(B,),                                           # one batch elem / step
        in_specs=[
            pl.BlockSpec((1, T * P2, K1), lambda b: (b, 0, 0)),
            pl.BlockSpec((K1, D), lambda b: (0, 0)),
            pl.BlockSpec((1, D), lambda b: (0, 0)),
            pl.BlockSpec((T, D, D), lambda b: (0, 0, 0)),
            pl.BlockSpec((1, D), lambda b: (0, 0)),
        ],
        out_specs=pl.BlockSpec((1, P2, D), lambda b: (b, 0, 0)),
        compiler_params=pltpu.CompilerParams(
            dimension_semantics=("parallel",)),
    )(p1d, w1m, b1m, w2t, b2m)

    return out                                   # == rearrange 'b c h w -> b (h w) c'


if __name__ == "__main__":
    # Small PatchEmbed2 config: num_channel=3, img 24x24, patch_size=8, embed_dim=32.
    B, C, H, W = 2, 3, 24, 24
    embed_dim = 32
    patch_size = 8
    coef = patch_size // 8
    ks1, stride1 = 8 * coef, 4 * coef
    ks2, stride2 = 3, 2

    key = jax.random.PRNGKey(0)
    kw1, kb1, kw2, kb2, kx = jax.random.split(key, 5)
    fan1 = C * ks1 * ks1
    fan2 = embed_dim * ks2 * ks2
    w1 = (jax.random.normal(kw1, (embed_dim, C, ks1, ks1)) / math.sqrt(fan1)).astype(jnp.float32)
    b1 = (0.01 * jax.random.normal(kb1, (embed_dim,))).astype(jnp.float32)
    w2 = (jax.random.normal(kw2, (embed_dim, embed_dim, ks2, ks2)) / math.sqrt(fan2)).astype(jnp.float32)
    b2 = (0.01 * jax.random.normal(kb2, (embed_dim,))).astype(jnp.float32)
    x = jax.random.uniform(kx, (B, C, H, W), dtype=jnp.float32)

    out = jax.block_until_ready(
        patch_embed2(x, w1, b1, w2, b2, ks1=ks1, stride1=stride1, ks2=ks2, stride2=stride2))

    # Reference: full-precision XLA convolutions + torch rearrange 'b c h w -> b (h w) c'.
    y1 = jax.lax.conv_general_dilated(x, w1, (stride1, stride1), "VALID",
                                      dimension_numbers=("NCHW", "OIHW", "NCHW"),
                                      precision=jax.lax.Precision.HIGHEST)
    y1 = jnp.maximum(y1 + b1[None, :, None, None], 0.0)
    y2 = jax.lax.conv_general_dilated(y1, w2, (stride2, stride2), "VALID",
                                      dimension_numbers=("NCHW", "OIHW", "NCHW"),
                                      precision=jax.lax.Precision.HIGHEST)
    y2 = y2 + b2[None, :, None, None]
    ref = jnp.transpose(y2, (0, 2, 3, 1)).reshape(B, -1, embed_dim)

    assert out.shape == ref.shape, (out.shape, ref.shape)
    # Kernel runs its matmuls with bf16 operands (f32 accumulation); the f32
    # reference therefore differs by small bf16 rounding, well inside 3e-2.
    np.testing.assert_allclose(np.asarray(out), np.asarray(ref), rtol=3e-2, atol=3e-2)
    assert bool(jnp.all(jnp.isfinite(out)))
    print("KERNEL_OK")
</pallas_src>

<mosaic_0001>
module attributes {stable_mosaic.version = 11 : i64} {
  func.func @_patch_embed2_kernel(%arg0: i32, %arg1: memref<1x36x192xbf16, #tpu.memory_space<vmem>>, %arg2: memref<192x32xbf16, #tpu.memory_space<vmem>>, %arg3: memref<1x32xf32, #tpu.memory_space<vmem>>, %arg4: memref<9x32x32xbf16, #tpu.memory_space<vmem>>, %arg5: memref<1x32xf32, #tpu.memory_space<vmem>>, %arg6: memref<1x4x32xf32, #tpu.memory_space<vmem>>) attributes {dimension_semantics = [#tpu.dimension_semantics<parallel>], iteration_bounds = array<i64: 2>, scalar_prefetch = 0 : i64, scratch_operands = 0 : i64, tpu.core_type = #tpu.core_type<tc>, window_params = [{transform_indices = @transform_0, window_bounds = array<i64: 1, 36, 192>}, {pipeline_mode = #tpu.pipeline_mode<synchronous>, transform_indices = @transform_1, window_bounds = array<i64: 192, 32>}, {pipeline_mode = #tpu.pipeline_mode<synchronous>, transform_indices = @transform_2, window_bounds = array<i64: 1, 32>}, {pipeline_mode = #tpu.pipeline_mode<synchronous>, transform_indices = @transform_3, window_bounds = array<i64: 9, 32, 32>}, {pipeline_mode = #tpu.pipeline_mode<synchronous>, transform_indices = @transform_4, window_bounds = array<i64: 1, 32>}, {transform_indices = @transform_5, window_bounds = array<i64: 1, 4, 32>}]} {
    %c0 = arith.constant 0 : index
    %c0_0 = arith.constant 0 : index
    %c0_1 = arith.constant 0 : index
    %0 = vector.load %arg1[%c0, %c0_0, %c0_1] : memref<1x36x192xbf16, #tpu.memory_space<vmem>>, vector<1x36x192xbf16>
    %1 = vector.shape_cast %0 : vector<1x36x192xbf16> to vector<36x192xbf16>
    %c0_2 = arith.constant 0 : index
    %c0_3 = arith.constant 0 : index
    %2 = vector.load %arg2[%c0_2, %c0_3] : memref<192x32xbf16, #tpu.memory_space<vmem>>, vector<192x32xbf16>
    %cst = arith.constant dense<0.000000e+00> : vector<36x32xf32>
    %3 = tpu.matmul %1, %2, %cst {dimension_numbers = #tpu.dot_dimension_numbers<[1], [0], [0], [1], [0, 0, 1, 1], [], []>} : vector<36x192xbf16>, vector<192x32xbf16>, vector<36x32xf32> -> vector<36x32xf32>
    %c0_4 = arith.constant 0 : index
    %c0_5 = arith.constant 0 : index
    %4 = vector.load %arg3[%c0_4, %c0_5] : memref<1x32xf32, #tpu.memory_space<vmem>>, vector<1x32xf32>
    %5 = vector.broadcast %4 : vector<1x32xf32> to vector<36x32xf32>
    %6 = arith.addf %3, %5 : vector<36x32xf32>
    %cst_6 = arith.constant 0.000000e+00 : f32
    %7 = vector.broadcast %cst_6 : f32 to vector<36x32xf32>
    %8 = arith.maximumf %6, %7 : vector<36x32xf32>
    %cst_7 = arith.constant 0.000000e+00 : f32
    %9 = vector.broadcast %cst_7 : f32 to vector<4x32xf32>
    %10 = vector.extract_strided_slice %8 {offsets = [0, 0], sizes = [4, 32], strides = [1, 1]} : vector<36x32xf32> to vector<4x32xf32>
    %11 = arith.truncf %10 : vector<4x32xf32> to vector<4x32xbf16>
    %c0_8 = arith.constant 0 : index
    %c0_9 = arith.constant 0 : index
    %c0_10 = arith.constant 0 : index
    %12 = vector.load %arg4[%c0_8, %c0_9, %c0_10] : memref<9x32x32xbf16, #tpu.memory_space<vmem>>, vector<1x32x32xbf16>
    %13 = vector.shape_cast %12 : vector<1x32x32xbf16> to vector<32x32xbf16>
    %cst_11 = arith.constant dense<0.000000e+00> : vector<4x32xf32>
    %14 = tpu.matmul %11, %13, %cst_11 {dimension_numbers = #tpu.dot_dimension_numbers<[1], [0], [0], [1], [0, 0, 1, 1], [], []>} : vector<4x32xbf16>, vector<32x32xbf16>, vector<4x32xf32> -> vector<4x32xf32>
    %15 = arith.addf %9, %14 : vector<4x32xf32>
    %16 = vector.extract_strided_slice %8 {offsets = [4, 0], sizes = [4, 32], strides = [1, 1]} : vector<36x32xf32> to vector<4x32xf32>
    %17 = arith.truncf %16 : vector<4x32xf32> to vector<4x32xbf16>
    %c1 = arith.constant 1 : index
    %c0_12 = arith.constant 0 : index
    %c0_13 = arith.constant 0 : index
    %18 = vector.load %arg4[%c1, %c0_12, %c0_13] : memref<9x32x32xbf16, #tpu.memory_space<vmem>>, vector<1x32x32xbf16>
    %19 = vector.shape_cast %18 : vector<1x32x32xbf16> to vector<32x32xbf16>
    %cst_14 = arith.constant dense<0.000000e+00> : vector<4x32xf32>
    %20 = tpu.matmul %17, %19, %cst_14 {dimension_numbers = #tpu.dot_dimension_numbers<[1], [0], [0], [1], [0, 0, 1, 1], [], []>} : vector<4x32xbf16>, vector<32x32xbf16>, vector<4x32xf32> -> vector<4x32xf32>
    %21 = arith.addf %15, %20 : vector<4x32xf32>
    %22 = vector.extract_strided_slice %8 {offsets = [8, 0], sizes = [4, 32], strides = [1, 1]} : vector<36x32xf32> to vector<4x32xf32>
    %23 = arith.truncf %22 : vector<4x32xf32> to vector<4x32xbf16>
    %c2 = arith.constant 2 : index
    %c0_15 = arith.constant 0 : index
    %c0_16 = arith.constant 0 : index
    %24 = vector.load %arg4[%c2, %c0_15, %c0_16] : memref<9x32x32xbf16, #tpu.memory_space<vmem>>, vector<1x32x32xbf16>
    %25 = vector.shape_cast %24 : vector<1x32x32xbf16> to vector<32x32xbf16>
    %cst_17 = arith.constant dense<0.000000e+00> : vector<4x32xf32>
    %26 = tpu.matmul %23, %25, %cst_17 {dimension_numbers = #tpu.dot_dimension_numbers<[1], [0], [0], [1], [0, 0, 1, 1], [], []>} : vector<4x32xbf16>, vector<32x32xbf16>, vector<4x32xf32> -> vector<4x32xf32>
    %27 = arith.addf %21, %26 : vector<4x32xf32>
    %28 = vector.extract_strided_slice %8 {offsets = [12, 0], sizes = [4, 32], strides = [1, 1]} : vector<36x32xf32> to vector<4x32xf32>
    %29 = arith.truncf %28 : vector<4x32xf32> to vector<4x32xbf16>
    %c3 = arith.constant 3 : index
    %c0_18 = arith.constant 0 : index
    %c0_19 = arith.constant 0 : index
    %30 = vector.load %arg4[%c3, %c0_18, %c0_19] : memref<9x32x32xbf16, #tpu.memory_space<vmem>>, vector<1x32x32xbf16>
    %31 = vector.shape_cast %30 : vector<1x32x32xbf16> to vector<32x32xbf16>
    %cst_20 = arith.constant dense<0.000000e+00> : vector<4x32xf32>
    %32 = tpu.matmul %29, %31, %cst_20 {dimension_numbers = #tpu.dot_dimension_numbers<[1], [0], [0], [1], [0, 0, 1, 1], [], []>} : vector<4x32xbf16>, vector<32x32xbf16>, vector<4x32xf32> -> vector<4x32xf32>
    %33 = arith.addf %27, %32 : vector<4x32xf32>
    %34 = vector.extract_strided_slice %8 {offsets = [16, 0], sizes = [4, 32], strides = [1, 1]} : vector<36x32xf32> to vector<4x32xf32>
    %35 = arith.truncf %34 : vector<4x32xf32> to vector<4x32xbf16>
    %c4 = arith.constant 4 : index
    %c0_21 = arith.constant 0 : index
    %c0_22 = arith.constant 0 : index
    %36 = vector.load %arg4[%c4, %c0_21, %c0_22] : memref<9x32x32xbf16, #tpu.memory_space<vmem>>, vector<1x32x32xbf16>
    %37 = vector.shape_cast %36 : vector<1x32x32xbf16> to vector<32x32xbf16>
    %cst_23 = arith.constant dense<0.000000e+00> : vector<4x32xf32>
    %38 = tpu.matmul %35, %37, %cst_23 {dimension_numbers = #tpu.dot_dimension_numbers<[1], [0], [0], [1], [0, 0, 1, 1], [], []>} : vector<4x32xbf16>, vector<32x32xbf16>, vector<4x32xf32> -> vector<4x32xf32>
    %39 = arith.addf %33, %38 : vector<4x32xf32>
    %40 = vector.extract_strided_slice %8 {offsets = [20, 0], sizes = [4, 32], strides = [1, 1]} : vector<36x32xf32> to vector<4x32xf32>
    %41 = arith.truncf %40 : vector<4x32xf32> to vector<4x32xbf16>
    %c5 = arith.constant 5 : index
    %c0_24 = arith.constant 0 : index
    %c0_25 = arith.constant 0 : index
    %42 = vector.load %arg4[%c5, %c0_24, %c0_25] : memref<9x32x32xbf16, #tpu.memory_space<vmem>>, vector<1x32x32xbf16>
    %43 = vector.shape_cast %42 : vector<1x32x32xbf16> to vector<32x32xbf16>
    %cst_26 = arith.constant dense<0.000000e+00> : vector<4x32xf32>
    %44 = tpu.matmul %41, %43, %cst_26 {dimension_numbers = #tpu.dot_dimension_numbers<[1], [0], [0], [1], [0, 0, 1, 1], [], []>} : vector<4x32xbf16>, vector<32x32xbf16>, vector<4x32xf32> -> vector<4x32xf32>
    %45 = arith.addf %39, %44 : vector<4x32xf32>
    %46 = vector.extract_strided_slice %8 {offsets = [24, 0], sizes = [4, 32], strides = [1, 1]} : vector<36x32xf32> to vector<4x32xf32>
    %47 = arith.truncf %46 : vector<4x32xf32> to vector<4x32xbf16>
    %c6 = arith.constant 6 : index
    %c0_27 = arith.constant 0 : index
    %c0_28 = arith.constant 0 : index
    %48 = vector.load %arg4[%c6, %c0_27, %c0_28] : memref<9x32x32xbf16, #tpu.memory_space<vmem>>, vector<1x32x32xbf16>
    %49 = vector.shape_cast %48 : vector<1x32x32xbf16> to vector<32x32xbf16>
    %cst_29 = arith.constant dense<0.000000e+00> : vector<4x32xf32>
    %50 = tpu.matmul %47, %49, %cst_29 {dimension_numbers = #tpu.dot_dimension_numbers<[1], [0], [0], [1], [0, 0, 1, 1], [], []>} : vector<4x32xbf16>, vector<32x32xbf16>, vector<4x32xf32> -> vector<4x32xf32>
    %51 = arith.addf %45, %50 : vector<4x32xf32>
    %52 = vector.extract_strided_slice %8 {offsets = [28, 0], sizes = [4, 32], strides = [1, 1]} : vector<36x32xf32> to vector<4x32xf32>
    %53 = arith.truncf %52 : vector<4x32xf32> to vector<4x32xbf16>
    %c7 = arith.constant 7 : index
    %c0_30 = arith.constant 0 : index
    %c0_31 = arith.constant 0 : index
    %54 = vector.load %arg4[%c7, %c0_30, %c0_31] : memref<9x32x32xbf16, #tpu.memory_space<vmem>>, vector<1x32x32xbf16>
    %55 = vector.shape_cast %54 : vector<1x32x32xbf16> to vector<32x32xbf16>
    %cst_32 = arith.constant dense<0.000000e+00> : vector<4x32xf32>
    %56 = tpu.matmul %53, %55, %cst_32 {dimension_numbers = #tpu.dot_dimension_numbers<[1], [0], [0], [1], [0, 0, 1, 1], [], []>} : vector<4x32xbf16>, vector<32x32xbf16>, vector<4x32xf32> -> vector<4x32xf32>
    %57 = arith.addf %51, %56 : vector<4x32xf32>
    %58 = vector.extract_strided_slice %8 {offsets = [32, 0], sizes = [4, 32], strides = [1, 1]} : vector<36x32xf32> to vector<4x32xf32>
    %59 = arith.truncf %58 : vector<4x32xf32> to vector<4x32xbf16>
    %c8 = arith.constant 8 : index
    %c0_33 = arith.constant 0 : index
    %c0_34 = arith.constant 0 : index
    %60 = vector.load %arg4[%c8, %c0_33, %c0_34] : memref<9x32x32xbf16, #tpu.memory_space<vmem>>, vector<1x32x32xbf16>
    %61 = vector.shape_cast %60 : vector<1x32x32xbf16> to vector<32x32xbf16>
    %cst_35 = arith.constant dense<0.000000e+00> : vector<4x32xf32>
    %62 = tpu.matmul %59, %61, %cst_35 {dimension_numbers = #tpu.dot_dimension_numbers<[1], [0], [0], [1], [0, 0, 1, 1], [], []>} : vector<4x32xbf16>, vector<32x32xbf16>, vector<4x32xf32> -> vector<4x32xf32>
    %63 = arith.addf %57, %62 : vector<4x32xf32>
    %c0_36 = arith.constant 0 : index
    %c0_37 = arith.constant 0 : index
    %64 = vector.load %arg5[%c0_36, %c0_37] : memref<1x32xf32, #tpu.memory_space<vmem>>, vector<1x32xf32>
    %65 = vector.broadcast %64 : vector<1x32xf32> to vector<4x32xf32>
    %66 = arith.addf %63, %65 : vector<4x32xf32>
    %c0_38 = arith.constant 0 : index
    %c0_39 = arith.constant 0 : index
    %c0_40 = arith.constant 0 : index
    %67 = vector.load %arg6[%c0_38, %c0_39, %c0_40] : memref<1x4x32xf32, #tpu.memory_space<vmem>>, vector<1x4x32xf32>
    %68 = vector.shape_cast %67 : vector<1x4x32xf32> to vector<4x32xf32>
    %69 = vector.shape_cast %66 : vector<4x32xf32> to vector<1x4x32xf32>
    tpu.vector_store %arg6[%c0_38, %c0_39, %c0_40], %69 {strides = array<i32>} : memref<1x4x32xf32, #tpu.memory_space<vmem>>, vector<1x4x32xf32>,
    return
  }
  func.func @transform_0(%arg0: i32) -> (i32, i32, i32) {
    %c0_i32 = arith.constant 0 : i32
    %c0_i32_0 = arith.constant 0 : i32
    %c0_i32_1 = arith.constant 0 : i32
    return %arg0, %c0_i32, %c0_i32_0 : i32, i32, i32
  }
  func.func @transform_1(%arg0: i32) -> (i32, i32) {
    %c0_i32 = arith.constant 0 : i32
    %c0_i32_0 = arith.constant 0 : i32
    %c0_i32_1 = arith.constant 0 : i32
    return %c0_i32, %c0_i32_0 : i32, i32
  }
  func.func @transform_2(%arg0: i32) -> (i32, i32) {
    %c0_i32 = arith.constant 0 : i32
    %c0_i32_0 = arith.constant 0 : i32
    %c0_i32_1 = arith.constant 0 : i32
    return %c0_i32, %c0_i32_0 : i32, i32
  }
  func.func @transform_3(%arg0: i32) -> (i32, i32, i32) {
    %c0_i32 = arith.constant 0 : i32
    %c0_i32_0 = arith.constant 0 : i32
    %c0_i32_1 = arith.constant 0 : i32
    %c0_i32_2 = arith.constant 0 : i32
    return %c0_i32, %c0_i32_0, %c0_i32_1 : i32, i32, i32
  }
  func.func @transform_4(%arg0: i32) -> (i32, i32) {
    %c0_i32 = arith.constant 0 : i32
    %c0_i32_0 = arith.constant 0 : i32
    %c0_i32_1 = arith.constant 0 : i32
    return %c0_i32, %c0_i32_0 : i32, i32
  }
  func.func @transform_5(%arg0: i32) -> (i32, i32, i32) {
    %c0_i32 = arith.constant 0 : i32
    %c0_i32_0 = arith.constant 0 : i32
    %c0_i32_1 = arith.constant 0 : i32
    return %arg0, %c0_i32, %c0_i32_0 : i32, i32, i32
  }
}

</mosaic_0001>

<bundles_post_ra>
// kernel: patch_embed2.1
= control target key start
LH: loop header
LB: loop body
LE: loop exit
PB: predicated region body
PF: predicated region fallthrough
CT: control target
= control target key end

     0   :  { %10 = vsyncpa [#allocation3], 0  ;;  %s1698_s0 = inlined_call_operand.vmem [shape: bf16[2,36,192], index: 0, kind: input, shape index: {}]   ;;  %s1699_s1 = inlined_call_operand.vmem [shape: bf16[192,32], index: 1, kind: input, shape index: {}]   ;;  %s1700_s2 = inlined_call_operand.vmem [shape: f32[1,32], index: 2, kind: input, shape index: {}]   ;;  %s1701_s3 = inlined_call_operand.vmem [shape: bf16[9,32,32], index: 3, kind: input, shape index: {}]   ;;  %s1702_s4 = inlined_call_operand.vmem [shape: f32[1,32], index: 4, kind: input, shape index: {}]   ;;  %s1703_s5 = inlined_call_operand.hbm [shape: f32[2,4,32], index: 5, kind: output, shape index: {}]  }
   0x1   :  { %12 = vsyncpa [#allocation3 + $0x1], 0  ;;  %s1440_s18 = smov 0   ;;  %s1442_s19 = smov 0  }
   0x2   :  { %s1444_s20 = smov 0   ;;  %s1446_s21 = smov 0  }
   0x3 LB: > { %s1461_s22 = sadd.s32 4294967295, %s1404_s21   ;;  %s1070_s23 = sadd.s32 4294967294, %s1404_s21   ;;  %s1404_s21 = sphi %s1446_s21, %s1709_s21   ;;  %s1400_s20 = sphi %s1444_s20, %s1708_s20   ;;  %s1396_s19 = sphi %s1442_s19, %s1707_s19   ;;  %s1392_s18 = sphi %s1440_s18, %s1706_s18  }
   0x4   : > { %s1465_s24 = sadd.s32 1, %s1404_s21   ;;  %s135_s25 = sadd.s32 1, %s1400_s20 }
   0x5   : > { %s132_s26 = ssub.s32 %s1404_s21, %s1465_s24  ;;  %p145_p0 = scmp.ne.s32.totalorder %s1400_s20, %s1396_s19 }
   0x6   : > { %p133_p1 = scmp.eq.s32.totalorder %s132_s26, 0  ;;  %p146_p2 = scmp.eq.s32.totalorder %s1461_s22, 1 }
   0x7   : > { %p151_p3 = scmp.ne.s32.totalorder %s1396_s19, %s1392_s18  ;;  %p152_p4 = scmp.eq.s32.totalorder %s1070_s23, 1 }
   0x8   : > { %s1476_s27 = scalar_select %p133_p1, %s1400_s20, %s135_s25  }
   0x9   : > { %p1478_p5 = por %p146_p2, %p145_p0  ;;  %p1482_p6 = por %p152_p4, %p151_p3 }
   0xa   : > { %p1073_p7 = scmp.ge.s32.totalorder %s1404_s21, 1  ;;  %p190_p8 = scmp.lt.s32.totalorder %s1404_s21, 3 }
   0xc   : > { %p191_p9 = pnand %p1073_p7, %p190_p8 }
   0xd   : > { %v1304_v0 = vld [vmem:[%s1699_s1] sm:$0xff] (!%p191_p9)   ;;  %v1406_v1 = vmov (!%p191_p9), 0   ;;  %p218_p10 = scmp.lt.s32.totalorder (!%p191_p9), %s1461_s22, 1  ;;  %v1305_v2 = vld [vmem:[%s1699_s1 + $0x8] sm:$0xff] (!%p191_p9)   ;;  %v1306_v3 = vld [vmem:[%s1699_s1 + $0x10] sm:$0xff] (!%p191_p9)   ;;  %vm356_vm0 = vcmask (!%p191_p9), 523264  }
   0xe   : > { %194 = sbr.rel (%p191_p9) target bundleno = 570 (0x23a), region = 40  ;;  %366 = vmatprep.subr.bf16.mxu0 (!%p191_p9), %v1406_v1  ;;  %v1307_v4 = vld [vmem:[%s1699_s1 + $0x18] sm:$0xff] (!%p191_p9)   ;;  %v1308_v6 = vld [vmem:[%s1699_s1 + $0x20] sm:$0xff] (!%p191_p9)   ;;  %v1309_v7 = vld [vmem:[%s1699_s1 + $0x28] sm:$0xff] (!%p191_p9)   ;;  %v1407_v21 = vmov (!%p191_p9), 0.0   ;;  %vm1408_vm1 = vmmov (!%p191_p9), 0  }
   0xf   : > { %367 = vmatpush1.bf16.msra.mxu0 (!%p191_p9), %v1304_v0  ;;  %v1310_v8 = vld [vmem:[%s1699_s1 + $0x30] sm:$0xff] (!%p191_p9)   ;;  %v1311_v9 = vld [vmem:[%s1699_s1 + $0x38] sm:$0xff] (!%p191_p9)   ;;  %v1312_v10 = vld [vmem:[%s1699_s1 + $0x40] sm:$0xff] (!%p191_p9)   ;;  %1189 = vmatprep.subr.bf16.mxu1 (!%p191_p9), %v1407_v21  ;;  %vm451_vm2 = vcmask (!%p191_p9), 261120   ;;  %s215_s8 = sand.u32 (!%p191_p9), 1, %s1396_s19   ;;  %vm995_vm3 = vcmask (!%p191_p9), 257024  }
  0x10   : > { %368 = vmatprep.subr.bf16.mxu0 (!%p191_p9), %v1406_v1  ;;  %v1313_v11 = vld [vmem:[%s1699_s1 + $0x48] sm:$0xff] (!%p191_p9)   ;;  %v1314_v12 = vld [vmem:[%s1699_s1 + $0x50] sm:$0xff] (!%p191_p9)   ;;  %v1315_v13 = vld [vmem:[%s1699_s1 + $0x58] sm:$0xff] (!%p191_p9)   ;;  %1193 = vmatprep.mubr.msk.bf16.mxu1 (!%p191_p9), %vm1408_vm1, %v1407_v21  ;;  %s998_s25 = scalar_lea.sflag (!%p191_p9), [#allocation3], %s215_s8 }
  0x11   : > { %v1324_v20 = vld [vmem:[%s1701_s3 + $0x10] sm:$0xff] (!%p191_p9)   ;;  %v1325_v22 = vld [vmem:[%s1701_s3 + $0x18] sm:$0xff] (!%p191_p9)   ;;  %v1335_v23 = vld [vmem:[%s1701_s3 + $0x80] sm:$0xff] (!%p191_p9)  }
  0x12   : > { %1190 = vmatpush3.bf16.msra.mxu1 (!%p191_p9), %v1324_v20  ;;  %v1339_v24 = vld [vmem:[%s1701_s3 + $0x88] sm:$0xff] (!%p191_p9)   ;;  %v1563_v25 = vld [vmem:[%s1700_s2] ss:$0 sm:$0xff] (!%p191_p9)  ;;  %v1330_v51 = vld [vmem:[%s1701_s3 + $0x30] sm:$0xff] (!%p191_p9)  }
  0x13   : > { %369 = vmatpush1.bf16.msra.mxu0 (!%p191_p9), %v1305_v2  ;;  %1191 = vmatprep.subr.bf16.mxu1 (!%p191_p9), %v1407_v21  ;;  %v1326_v33 = vld [vmem:[%s1701_s3] sm:$0xff] (!%p191_p9)   ;;  %v1327_v37 = vld [vmem:[%s1701_s3 + $0x8] sm:$0xff] (!%p191_p9)   ;;  %v1331_v53 = vld [vmem:[%s1701_s3 + $0x38] sm:$0xff] (!%p191_p9)  }
  0x14   : > { %370 = vmatprep.subr.bf16.mxu0 (!%p191_p9), %v1406_v1  ;;  %v1328_v40 = vld [vmem:[%s1701_s3 + $0x20] sm:$0xff] (!%p191_p9)   ;;  %v1329_v45 = vld [vmem:[%s1701_s3 + $0x28] sm:$0xff] (!%p191_p9)   ;;  %v1334_v60 = vld [vmem:[%s1701_s3 + $0x50] sm:$0xff] (!%p191_p9)  }
  0x15   : > { %s219_s9 = scalar_select %p218_p10, %s1461_s22, 1  ;;  %v1332_v55 = vld [vmem:[%s1701_s3 + $0x40] sm:$0xff]   ;;  %v1333_v58 = vld [vmem:[%s1701_s3 + $0x48] sm:$0xff]   ;;  %v1336_v61 = vld [vmem:[%s1701_s3 + $0x58] sm:$0xff]  }
  0x16   : > { %1192 = vmatpush3.bf16.msra.mxu1 %v1325_v22  ;;  %v1337_v62 = vld [vmem:[%s1701_s3 + $0x60] sm:$0xff]  }
  0x17   : > { %s1261_s12 = smul.u32 40, %s219_s9  ;;  %371 = vmatpush1.bf16.msra.mxu0 %v1306_v3  ;;  %1197 = vmatprep.subr.bf16.mxu1 %v1407_v21  ;;  %v1340_v3 = vld [vmem:[%s1701_s3 + $0x70] sm:$0xff]   ;;  %s1074_s9 = sshll.u32 %s215_s8, 2 }
  0x18   : > { %372 = vmatprep.subr.bf16.mxu0 %v1406_v1  ;;  %s217_s13 = scalar_lea.vmem [#allocation2], %s1074_s9 }
  0x19   : > { %s1505_s17 = scalar_lea.vmem %s1698_s0, %s1261_s12  ;;  %s1159_s12 = sshll.u32 %s1461_s22, 6 }
  0x1a   : > { %v1318_v5 = vld [vmem:[%s1505_s17 + $0x4] ss:$8 sps:$4 sm:$0xff]   ;;  %v1316_v14 = vld [vmem:[%s1505_s17] ss:$8 sps:$4 sm:$0xff]   ;;  %v1319_v15 = vld [vmem:[%s1505_s17 + $0x14] ss:$8 sps:$4 sm:$0xff]   ;;  %s1656_s23 = scalar_lea.hbm %s1703_s5, %s1159_s12 }
  0x1b   : > { %373 = vmatpush1.bf16.msra.mxu0 %v1307_v4  ;;  %1095 = vmatprep.mubr.msk.bf16.mxu0 %vm356_vm0, %v1318_v5  ;;  %v228_v16 = vld [vmem:[%s1505_s17 + $0x20] sm:$0x33]  ;;  %v1321_v17 = vld [vmem:[%s1505_s17 + $0x10] ss:$8 sps:$4 sm:$0xff]   ;;  %s1011_s14 = sshll.u32 %s217_s13, 4  ;;  %s1409_s22 = smov [#allocation2]   ;;  %s1658_s14 = int_to_ptr.vmem [resolvable:$true] %s1011_s14 }
  0x1c   : > { %374 = vmatprep.subr.bf16.mxu0 %v1406_v1  ;;  %v1082_v18 = vcombine.high %v228_v16, %v228_v16  ;;  %v1081_v19 = vcombine.low %v228_v16, %v228_v16  ;;  %v1341_v5 = vld [vmem:[%s1701_s3 + $0x78] sm:$0xff]   ;;  %s1342_s26 = scalar_lea.vmem %s1658_s14, 64  ;;  %s1346_s30 = sshll.u32 %s1409_s22, 4  ;;  %s1347_s30 = int_to_ptr.vmem [resolvable:$false] %s1346_s30 }
  0x1d   : > { %p1343_p11 = scmp.ne.s32.totalorder %s1658_s14, %s1342_s26  ;;  %s1348_s17 = scalar_lea.vmem %s1347_s30, 128 }
  0x1e   : > { %p1349_p0 = scmp.lt.s32.totalorder %s1658_s14, %s1347_s30  ;;  %p1350_p1 = scmp.lt.s32.totalorder %s1348_s17, %s1342_s26 }
  0x1f   : > { %375 = vmatpush1.bf16.msra.mxu0 %v1308_v6  ;;  %p1344_p12 = pnand %p1343_p11, %p1478_p5 }
  0x20   : > { %376 = vmatprep.subr.bf16.mxu0 %v1406_v1  ;;  %p1351_p2 = por %p1350_p1, %p1349_p0 }
  0x21   : > { %p1345_p13 = pneg %p1344_p12 }
  0x23   : > { %377 = vmatpush1.bf16.msra.mxu0 %v1309_v7  ;;  %p1352_p3 = pnand %p1351_p2, %p1345_p13 }
  0x24   : > { %378 = vmatprep.subr.bf16.mxu0 %v1406_v1 }
  0x27   : > { %379 = vmatpush1.bf16.msra.mxu0 %v1310_v8 }
  0x28   : > { %380 = vmatprep.subr.bf16.mxu0 %v1406_v1 }
  0x2b   : > { %381 = vmatpush1.bf16.msra.mxu0 %v1311_v9 }
  0x2c   : > { %382 = vmatprep.subr.bf16.mxu0 %v1406_v1 }
  0x2f   : > { %383 = vmatpush1.bf16.msra.mxu0 %v1312_v10 }
  0x30   : > { %384 = vmatprep.subr.bf16.mxu0 %v1406_v1 }
  0x33   : > { %385 = vmatpush1.bf16.msra.mxu0 %v1313_v11 }
  0x34   : > { %386 = vmatprep.subr.bf16.mxu0 %v1406_v1 }
  0x37   : > { %387 = vmatpush1.bf16.msra.mxu0 %v1314_v12 }
  0x38   : > { %388 = vmatprep.subr.bf16.mxu0 %v1406_v1  ;;  %v1338_v1 = vld [vmem:[%s1701_s3 + $0x68] sm:$0xff]  }
  0x3b   : > { %389 = vmatpush1.bf16.msra.mxu0 %v1315_v13 }
  0x3c   : > { %1253 = vmatprep.subr.bf16.mxu0 %v1407_v21 }
  0x3e   : > { %399 = vmatmul.mubr.bf16.vlgmr.msra.gmra.mrb[0].mxu0 %v1316_v14 }
  0x3f   : > { %1096 = vmatprep.mubr.msk.bf16.mxu0 %vm356_vm0, %v1319_v15  ;;  %1254 = vmatpush3.bf16.msra.mxu0 %v1335_v23 }
  0x40   : > { %1255 = vmatprep.subr.bf16.mxu0 %v1407_v21 }
  0x43   : > { %1256 = vmatpush3.bf16.msra.mxu0 %v1339_v24 }
  0x46   : > { %407 = vmatmul.mubr.bf16.gmra.mrb[4].mxu0 %v1321_v17 }
  0x47   : > { %1097 = vmatprep.mubr.msk.bf16.mxu0 %vm356_vm0, %v1082_v18 }
  0x4e   : > { %415 = vmatmul.mubr.bf16.gmra.mrb[8].mxu0 %v1081_v19 }
  0x4f   : > { %1257 = vmatprep.mubr.msk.bf16.mxu0 %vm1408_vm1, %v1407_v21 }
 0x111   : > { %v400_v26 = vpop.f32.mrb[0].mxu0 }
 0x112   : > { %v401_v27 = vadd.f32 %v1563_v25, %v400_v26  ;;  %v402_v28 = vpop.f32.mrb[1].mxu0 }
 0x113   : > { %v403_v29 = vpop.f32.mrb[2].mxu0 }
 0x114   : > { %v422_v30 = vmax.f32 %v401_v27, 0.0  ;;  %v405_v31 = vpop.f32.mrb[3].mxu0  ;;  %v404_v41 = vadd.f32 %v1563_v25, %v403_v29 }
 0x116   : > { %v427_v32 = vpack.c.bf16 %v422_v30, %v422_v30  ;;  %v423_v47 = vmax.f32 %v404_v41, 0.0 }
 0x118   : > { %v438_v34 = vrot.slane %v427_v32, 2  ;;  %v550_v52 = vpack.c.bf16 %v423_v47, %v423_v47 }
 0x119   : > { %v408_v35 = vpop.f32.mrb[4].mxu0 }
 0x11a   : > { %1194 = vmatmul.mubr.msk.bf16.vlgmr.msra.gmra.mrb[0].mxu1 %vm451_vm2, %v438_v34  ;;  %v410_v36 = vpop.f32.mrb[5].mxu0  ;;  %v409_v54 = vadd.f32 %v1563_v25, %v408_v35  ;;  %v618_v56 = vrot.slane %v550_v52, 2 }
 0x11b   : > { %1198 = vmatpush3.bf16.msra.mxu1 %v1326_v33  ;;  %1201 = vmatprep.mubr.msk.bf16.mxu1 %vm1408_vm1, %v1407_v21  ;;  %v411_v38 = vpop.f32.mrb[6].mxu0 }
 0x11c   : > { %1199 = vmatprep.subr.bf16.mxu1 %v1407_v21  ;;  %v413_v39 = vpop.f32.mrb[7].mxu0  ;;  %v424_v57 = vmax.f32 %v409_v54, 0.0  ;;  %v412_v0 = vadd.f32 %v1563_v25, %v411_v38 }
 0x11e   : > { %v675_v59 = vpack.c.bf16 %v424_v57, %v424_v57  ;;  %v425_v2 = vmax.f32 %v412_v0, 0.0 }
 0x11f   : > { %1200 = vmatpush3.bf16.msra.mxu1 %v1327_v37 }
 0x120   : > { %1205 = vmatprep.subr.bf16.mxu1 %v1407_v21  ;;  %v743_v63 = vrot.slane %v675_v59, 2  ;;  %v800_v4 = vpack.c.bf16 %v425_v2, %v425_v2 }
 0x121   : > { %v416_v42 = vpop.f32.mrb[8].mxu0 }
 0x122   : > { %1202 = vmatmul.mubr.msk.bf16.vlgmr.msra.gmra.mrb[4].mxu1 %vm451_vm2, %v427_v32  ;;  %v417_v43 = vadd.f32 %v1563_v25, %v416_v42  ;;  %v418_v44 = vpop.f32.mrb[9].mxu0  ;;  %v868_v6 = vrot.slane %v800_v4, 2 }
 0x123   : > { %1206 = vmatpush3.bf16.msra.mxu1 %v1328_v40  ;;  %1209 = vmatprep.mubr.msk.bf16.mxu1 %vm1408_vm1, %v1407_v21  ;;  %v419_v46 = vpop.f32.mrb[10].mxu0 }
 0x124   : > { %1207 = vmatprep.subr.bf16.mxu1 %v1407_v21  ;;  %v426_v48 = vmax.f32 %v417_v43, 0.0  ;;  %v420_v49 = vpop.f32.mrb[11].mxu0 }
 0x126   : > { %v925_v50 = vpack.c.bf16 %v426_v48, %v426_v48  ;;  %v1157_v48 = vld [vmem:[%s1702_s4] ss:$0 sm:$0xff] }
 0x127   : > { %1208 = vmatpush3.bf16.msra.mxu1 %v1329_v45 }
 0x128   : > { %1213 = vmatprep.subr.bf16.mxu1 %v1407_v21  ;;  %1258 = vmatmul.mubr.msk.bf16.vlgmr.msra.gmra.mrb[12].mxu0 %vm451_vm2, %v925_v50 }
 0x12a   : > { %1210 = vmatmul.mubr.msk.bf16.vlgmr.msra.gmra.mrb[8].mxu1 %vm451_vm2, %v550_v52 }
 0x12b   : > { %1214 = vmatpush3.bf16.msra.mxu1 %v1330_v51  ;;  %1217 = vmatprep.mubr.msk.bf16.mxu1 %vm1408_vm1, %v1407_v21 }
 0x12c   : > { %1215 = vmatprep.subr.bf16.mxu1 %v1407_v21 }
 0x12f   : > { %1216 = vmatpush3.bf16.msra.mxu1 %v1331_v53 }
 0x130   : > { %1221 = vmatprep.subr.bf16.mxu1 %v1407_v21 }
 0x132   : > { %1218 = vmatmul.mubr.msk.bf16.vlgmr.msra.gmra.mrb[12].mxu1 %vm451_vm2, %v618_v56 }
 0x133   : > { %1222 = vmatpush3.bf16.msra.mxu1 %v1332_v55  ;;  %1225 = vmatprep.mubr.msk.bf16.mxu1 %vm1408_vm1, %v1407_v21 }
 0x134   : > { %1223 = vmatprep.subr.bf16.mxu1 %v1407_v21 }
 0x137   : > { %1224 = vmatpush3.bf16.msra.mxu1 %v1333_v58 }
 0x138   : > { %1229 = vmatprep.subr.bf16.mxu1 %v1407_v21 }
 0x13a   : > { %1226 = vmatmul.mubr.msk.bf16.vlgmr.msra.gmra.mrb[16].mxu1 %vm451_vm2, %v675_v59 }
 0x13b   : > { %1230 = vmatpush3.bf16.msra.mxu1 %v1334_v60  ;;  %1233 = vmatprep.mubr.msk.bf16.mxu1 %vm1408_vm1, %v1407_v21 }
 0x13c   : > { %1231 = vmatprep.subr.bf16.mxu1 %v1407_v21 }
 0x13f   : > { %1232 = vmatpush3.bf16.msra.mxu1 %v1336_v61 }
 0x140   : > { %1237 = vmatprep.subr.bf16.mxu1 %v1407_v21 }
 0x142   : > { %1234 = vmatmul.mubr.msk.bf16.vlgmr.msra.gmra.mrb[20].mxu1 %vm451_vm2, %v743_v63 }
 0x143   : > { %1238 = vmatpush3.bf16.msra.mxu1 %v1337_v62  ;;  %1241 = vmatprep.mubr.msk.bf16.mxu1 %vm1408_vm1, %v1407_v21 }
 0x144   : > { %1239 = vmatprep.subr.bf16.mxu1 %v1407_v21 }
 0x147   : > { %1240 = vmatpush3.bf16.msra.mxu1 %v1338_v1 }
 0x148   : > { %1245 = vmatprep.subr.bf16.mxu1 %v1407_v21 }
 0x14a   : > { %1242 = vmatmul.mubr.msk.bf16.vlgmr.msra.gmra.mrb[24].mxu1 %vm451_vm2, %v800_v4 }
 0x14b   : > { %1246 = vmatpush3.bf16.msra.mxu1 %v1340_v3  ;;  %1249 = vmatprep.mubr.msk.bf16.mxu1 %vm1408_vm1, %v1407_v21 }
 0x14c   : > { %1247 = vmatprep.subr.bf16.mxu1 %v1407_v21 }
 0x14f   : > { %1248 = vmatpush3.bf16.msra.mxu1 %v1341_v5 }
 0x152   : > { %1250 = vmatmul.mubr.msk.bf16.vlgmr.msra.gmra.mrb[28].mxu1 %vm451_vm2, %v868_v6 }
 0x1ed   : > { %v489_v7 = vpop.f32.mrb[0].mxu1 }
 0x1ee   : > { %v1195_v8 = vpop.f32.mrb[1].mxu1 }
 0x1ef   : > { %v492_v9 = vpop.f32.mrb[2].mxu1 }
 0x1f0   : > { %v1196_v10 = vpop.f32.mrb[3].mxu1 }
 0x1f5   : > { %v544_v11 = vpop.f32.mrb[4].mxu1 }
 0x1f6   : > { %v545_v12 = vadd.f32 %v544_v11, %v489_v7  ;;  %v1203_v13 = vpop.f32.mrb[5].mxu1 }
 0x1f7   : > { %v547_v14 = vpop.f32.mrb[6].mxu1 }
 0x1f8   : > { %v1204_v15 = vpop.f32.mrb[7].mxu1 }
 0x1fb   : > { %v980_v16 = vpop.f32.mrb[12].mxu0 }
 0x1fc   : > { %v1259_v17 = vpop.f32.mrb[13].mxu0 }
 0x1fd   : > { %v605_v18 = vpop.f32.mrb[8].mxu1  ;;  %v983_v19 = vpop.f32.mrb[14].mxu0 }
 0x1fe   : > { %v611_v20 = vadd.f32 %v605_v18, %v545_v12  ;;  %v1211_v22 = vpop.f32.mrb[9].mxu1  ;;  %v1260_v21 = vpop.f32.mrb[15].mxu0 }
 0x1ff   : > { %v608_v23 = vpop.f32.mrb[10].mxu1 }
 0x200   : > { %v1212_v24 = vpop.f32.mrb[11].mxu1 }
 0x205   : > { %v668_v25 = vpop.f32.mrb[12].mxu1 }
 0x206   : > { %v674_v26 = vadd.f32 %v668_v25, %v611_v20  ;;  %v1219_v27 = vpop.f32.mrb[13].mxu1 }
 0x207   : > { %v671_v28 = vpop.f32.mrb[14].mxu1 }
 0x208   : > { %v1220_v29 = vpop.f32.mrb[15].mxu1 }
 0x20d   : > { %v730_v30 = vpop.f32.mrb[16].mxu1 }
 0x20e   : > { %v736_v31 = vadd.f32 %v730_v30, %v674_v26  ;;  %v1227_v32 = vpop.f32.mrb[17].mxu1 }
 0x20f   : > { %v733_v33 = vpop.f32.mrb[18].mxu1 }
 0x210   : > { %v1228_v34 = vpop.f32.mrb[19].mxu1 }
 0x215   : > { %v793_v35 = vpop.f32.mrb[20].mxu1 }
 0x216   : > { %v799_v36 = vadd.f32 %v793_v35, %v736_v31  ;;  %v1235_v37 = vpop.f32.mrb[21].mxu1 }
 0x217   : > { %v796_v38 = vpop.f32.mrb[22].mxu1 }
 0x218   : > { %v1236_v39 = vpop.f32.mrb[23].mxu1 }
 0x21d   : > { %v855_v40 = vpop.f32.mrb[24].mxu1 }
 0x21e   : > { %v861_v41 = vadd.f32 %v855_v40, %v799_v36  ;;  %v1243_v42 = vpop.f32.mrb[25].mxu1 }
 0x21f   : > { %v858_v43 = vpop.f32.mrb[26].mxu1 }
 0x220   : > { %v1244_v44 = vpop.f32.mrb[27].mxu1 }
 0x225   : > { %v918_v45 = vpop.f32.mrb[28].mxu1 }
 0x226   : > { %v924_v46 = vadd.f32 %v918_v45, %v861_v41  ;;  %v1251_v47 = vpop.f32.mrb[29].mxu1 }
 0x227   : > { %v921_v49 = vpop.f32.mrb[30].mxu1 }
 0x228   : > { %v986_v50 = vadd.f32 %v980_v16, %v924_v46  ;;  %v1252_v51 = vpop.f32.mrb[31].mxu1 }
 0x22a   : > { %v994_v52 = vadd.f32 %v1157_v48, %v986_v50 }
 0x22c   : > { %996 = vst.msk [vmem:[%s217_s13] sm:$0xf] %vm995_vm3, %v994_v52 }
 0x22d   : > { %1355 = shalt.err (!%p1352_p3)
}
 0x22e   : > { %s1356_s6 = scalar_lea.hbm %s1656_s23, 64  ;;  %s1360_s9 = scalar_lea.hbm %s1703_s5, 128 }
 0x22f   : > { %p1357_p4 = scmp.ne.s32.totalorder %s1656_s23, %s1356_s6  ;;  %p1361_p9 = scmp.lt.u32.totalorder %s1656_s23, %s1703_s5 }
 0x230   : > { %p1362_p10 = scmp.lt.u32.totalorder %s1360_s9, %s1356_s6  ;;  %p1364_p12 = scmp.lt.u32.totalorder %s1356_s6, %s1656_s23 }
 0x231   : > { %p1358_p7 = pnand %p1357_p4, %p1478_p5 }
 0x232   : > { %p1363_p11 = por %p1362_p10, %p1361_p9 }
 0x233   : > { %p1359_p8 = pneg %p1358_p7 }
 0x234   : > { %p1365_p13 = por %p1364_p12, %p1363_p11 }
 0x236   : > { %p1366_p0 = pnand %p1365_p13, %p1359_p8 }
 0x238   : > { %1369 = shalt.err (!%p1366_p0)
}
 0x239   : > { %1262 = dma.vmem_to_hbm [thread:$0]  (%p1478_p5), %s1658_s14, 64, %s1656_s23, %s998_s25  }
 0x23a PF: > { %p1268_p1 = scmp.ge.s32.totalorder %s1404_s21, 2  ;;  %s1023_s12 = sand.u32 1, %s1392_s18  }
 0x23b   : > { %s1024_s13 = scalar_lea.sflag [#allocation3], %s1023_s12 }
 0x23c   : > { %p1265_p2 = pnand %p1268_p1, %p1482_p6 }
 0x23e   : > { %1387 = dma.done.wait (!%p1265_p2), %s1024_s13, 64  }
 0x23f   : > { %1389 = vsyncadd (!%p1265_p2), %s1024_s13, 4294967232  ;;  %p15_p3 = scmp.ge.s32.totalorder %s1465_s24, 4   ;;  %s1706_s18 = smov %s1396_s19 }
 0x240   : > { %s1707_s19 = smov %s1400_s20  ;;  %s1708_s20 = smov %s1476_s27 }
 0x241   : > { %s1709_s21 = smov %s1465_s24  ;;  %17 = sbr.rel (!%p15_p3) target bundleno = 3 (0x3), region = 83 }
 0x248   :  { %1029 = vsyncpa [#allocation3], 1 }
 0x249   :  { %1031 = vsyncpa [#allocation3 + $0x1], 1 }

</bundles_post_ra>
